<compile_context>
chip_gen: v6e
topology: v6e:2x2x1
jax: 0.10.0
libtpu: 0.0.40
codegen_flags: <defaults>
</compile_context>

<pallas_src>
import math
from functools import partial

import jax
import jax.numpy as jnp
from jax import lax
from jax.experimental import pallas as pl
from jax.experimental.pallas import tpu as pltpu

_LANES = 128


def _clm_kernel(coef_ref, x_ref, o_ref, *, num_classes, link_function):
    """One grid step: x block (tile_rows, 128) -> class-major probs (C, tile_rows, 128).

    coef_ref (SMEM, shape (C-1,)):
      - logit:           exp(-threshold_k)   (exp factored out of the sigmoid)
      - probit/cloglog:  threshold_k
    """
    x = x_ref[...]                                   # (tile_rows, 128) f32, lane-dense
    nm1 = num_classes - 1

    if link_function == 'logit':
        ex = jnp.exp(x)                              # single EUP exp per element (hoisted)

    prev = None
    for k in range(nm1):                             # tiny static unroll over classes
        c = coef_ref[k]                              # SMEM scalar -> vector splat
        if link_function == 'probit':
            cdf = 0.5 * (1.0 + lax.erf((c - x) * (1.0 / math.sqrt(2.0))))
        elif link_function == 'cloglog':
            cdf = 1.0 - jnp.exp(-jnp.exp(c - x))
        else:  # 'logit'
            cdf = 1.0 / (1.0 + ex * c)
        if k == 0:
            o_ref[0] = cdf.astype(o_ref.dtype)                 # P(class 0) = cdf_0
        else:
            o_ref[k] = (cdf - prev).astype(o_ref.dtype)        # cdf_k - cdf_{k-1}
        prev = cdf
    o_ref[nm1] = (1.0 - prev).astype(o_ref.dtype)              # 1 - cdf_{C-2}


def _convert_thresholds(thresholds_b, thresholds_a, min_distance):
    """th[i] = sum_{j<i} param[j], param = [b, a**2 + min_distance]  (plain-JAX glue)."""
    a = thresholds_a.astype(jnp.float32) ** 2 + min_distance
    param = jnp.concatenate([thresholds_b.astype(jnp.float32), a], axis=0)  # (C-1,)
    th = jnp.concatenate([jnp.zeros((1,), jnp.float32), jnp.cumsum(param)[:-1]])
    return th  # (C-1,)


def clm_forward(x, thresholds_b, thresholds_a, *, link_function='logit',
                min_distance=0.0, tile_rows=1024, out_dtype=jnp.float32):
    """CLM forward.  Returns (m, num_classes) class probabilities, m = x.size."""
    num_classes = int(thresholds_a.shape[0]) + 2

    th = _convert_thresholds(thresholds_b, thresholds_a, min_distance)     # (C-1,)
    coef = jnp.exp(-th) if link_function == 'logit' else th                # SMEM scalars

    proj = x.reshape(-1).astype(jnp.float32)                               # row-major flatten
    m = proj.shape[0]

    # m on the lane axis: (rows, 128).  Tile over rows in MB-scale blocks.
    tile_rows = max(8, (int(tile_rows) // 8) * 8)
    rows = -(-m // _LANES)
    if rows <= tile_rows:
        block_rows = rows                       # single full-extent block (always legal)
        grid = 1
    else:
        block_rows = tile_rows                  # multiple of 8 -> unmasked sublanes
        grid = -(-rows // block_rows)
    rows_p = grid * block_rows
    m_p = rows_p * _LANES
    if m_p != m:                                # tiny pad only to lane/tile multiple
        proj = jnp.pad(proj, (0, m_p - m))
    proj2 = proj.reshape(rows_p, _LANES)

    # default tile: in block 0.5 MiB, out block C*0.5 MiB; double-buffered working set
    # stays well under the scoped-VMEM defaults on v5e/v6e/v7x.
    out = pl.pallas_call(
        partial(_clm_kernel, num_classes=num_classes, link_function=link_function),
        out_shape=jax.ShapeDtypeStruct((num_classes, rows_p, _LANES), out_dtype),
        grid=(grid,),
        in_specs=[
            pl.BlockSpec(memory_space=pltpu.MemorySpace.SMEM),              # thresholds/coef
            pl.BlockSpec((block_rows, _LANES), lambda i: (i, 0)),           # projected rows
        ],
        out_specs=pl.BlockSpec((num_classes, block_rows, _LANES), lambda i: (0, i, 0)),
        compiler_params=pltpu.CompilerParams(dimension_semantics=("parallel",)),
    )(coef, proj2)

    # Layout plumbing back to the module's (m, C) contract.
    out = jnp.transpose(out, (1, 2, 0)).reshape(rows_p * _LANES, num_classes)
    return out[:m]


def _clm_reference(x, thresholds_b, thresholds_a, link_function, min_distance):
    """Pure-JAX reference mirroring the PyTorch module (for verification)."""
    num_classes = thresholds_a.shape[0] + 2
    th = _convert_thresholds(thresholds_b, thresholds_a, min_distance)
    proj = x.reshape(-1).astype(jnp.float32)
    z = th[None, :] - proj[:, None]
    if link_function == 'probit':
        cdf = 0.5 * (1.0 + lax.erf(z / math.sqrt(2.0)))
    elif link_function == 'cloglog':
        cdf = 1.0 - jnp.exp(-jnp.exp(z))
    else:
        cdf = 1.0 / (1.0 + jnp.exp(-z))
    a3 = jnp.concatenate([cdf, jnp.ones((proj.shape[0], 1), jnp.float32)], axis=1)
    out = jnp.concatenate([a3[:, :1], a3[:, 1:] - a3[:, :-1]], axis=1)
    return out


if __name__ == "__main__":
    key = jax.random.PRNGKey(0)
    kx, kb, ka = jax.random.split(key, 3)

    num_classes = 5
    min_distance = 0.0

    # NCHW input, as the torch module would receive from a conv backbone
    x = jax.random.normal(kx, (2, 4, 16, 16), jnp.float32)

    # Deterministic parameter init matching the module's __init__ ranges:
    #   thresholds_b ~ U(0, 0.1),   shape (1,)
    #   thresholds_a ~ U(sqrt(1/(C-2)/2), sqrt(1/(C-2))),   shape (C-2,)
    thresholds_b = jax.random.uniform(kb, (1,), jnp.float32, 0.0, 0.1)
    lo = math.sqrt(1.0 / (num_classes - 2) / 2)
    hi = math.sqrt(1.0 / (num_classes - 2))
    thresholds_a = jax.random.uniform(ka, (num_classes - 2,), jnp.float32, lo, hi)

    for link_function in ('logit', 'cloglog'):
        out = clm_forward(x, thresholds_b, thresholds_a,
                          link_function=link_function, min_distance=min_distance)
        out = jax.block_until_ready(out)
        ref = _clm_reference(x, thresholds_b, thresholds_a, link_function, min_distance)
        assert out.shape == (x.size, num_classes)
        assert jnp.allclose(out, ref, atol=1e-5, rtol=1e-5), link_function

    print("KERNEL_OK")
</pallas_src>

<mosaic_0001>
module attributes {stable_mosaic.version = 11 : i64} {
  func.func @_clm_kernel(%arg0: i32, %arg1: memref<4xf32, #tpu.memory_space<smem>>, %arg2: memref<16x128xf32, #tpu.memory_space<vmem>>, %arg3: memref<5x16x128xf32, #tpu.memory_space<vmem>>) attributes {dimension_semantics = [#tpu.dimension_semantics<parallel>], iteration_bounds = array<i64: 1>, scalar_prefetch = 0 : i64, scratch_operands = 0 : i64, tpu.core_type = #tpu.core_type<tc>, window_params = [{transform_indices = @transform_0, window_bounds = array<i64: 4>}, {transform_indices = @transform_1, window_bounds = array<i64: 16, 128>}, {transform_indices = @transform_2, window_bounds = array<i64: 5, 16, 128>}]} {
    %c0 = arith.constant 0 : index
    %c0_0 = arith.constant 0 : index
    %0 = vector.load %arg2[%c0, %c0_0] : memref<16x128xf32, #tpu.memory_space<vmem>>, vector<16x128xf32>
    %1 = math.exp %0 : vector<16x128xf32>
    %c0_1 = arith.constant 0 : index
    %2 = memref.load %arg1[%c0_1] : memref<4xf32, #tpu.memory_space<smem>>
    %3 = vector.broadcast %2 : f32 to vector<16x128xf32>
    %4 = arith.mulf %1, %3 : vector<16x128xf32>
    %cst = arith.constant 1.000000e+00 : f32
    %5 = vector.broadcast %cst : f32 to vector<16x128xf32>
    %6 = arith.addf %5, %4 : vector<16x128xf32>
    %cst_2 = arith.constant 1.000000e+00 : f32
    %7 = vector.broadcast %cst_2 : f32 to vector<16x128xf32>
    %8 = arith.divf %7, %6 : vector<16x128xf32>
    %c0_3 = arith.constant 0 : index
    %c0_4 = arith.constant 0 : index
    %c0_5 = arith.constant 0 : index
    %9 = vector.load %arg3[%c0_3, %c0_4, %c0_5] : memref<5x16x128xf32, #tpu.memory_space<vmem>>, vector<1x16x128xf32>
    %10 = vector.shape_cast %9 : vector<1x16x128xf32> to vector<16x128xf32>
    %11 = vector.shape_cast %8 : vector<16x128xf32> to vector<1x16x128xf32>
    tpu.vector_store %arg3[%c0_3, %c0_4, %c0_5], %11 {strides = array<i32>} : memref<5x16x128xf32, #tpu.memory_space<vmem>>, vector<1x16x128xf32>,
    %c1 = arith.constant 1 : index
    %12 = memref.load %arg1[%c1] : memref<4xf32, #tpu.memory_space<smem>>
    %13 = vector.broadcast %12 : f32 to vector<16x128xf32>
    %14 = arith.mulf %1, %13 : vector<16x128xf32>
    %cst_6 = arith.constant 1.000000e+00 : f32
    %15 = vector.broadcast %cst_6 : f32 to vector<16x128xf32>
    %16 = arith.addf %15, %14 : vector<16x128xf32>
    %cst_7 = arith.constant 1.000000e+00 : f32
    %17 = vector.broadcast %cst_7 : f32 to vector<16x128xf32>
    %18 = arith.divf %17, %16 : vector<16x128xf32>
    %19 = arith.subf %18, %8 : vector<16x128xf32>
    %c1_8 = arith.constant 1 : index
    %c0_9 = arith.constant 0 : index
    %c0_10 = arith.constant 0 : index
    %20 = vector.load %arg3[%c1_8, %c0_9, %c0_10] : memref<5x16x128xf32, #tpu.memory_space<vmem>>, vector<1x16x128xf32>
    %21 = vector.shape_cast %20 : vector<1x16x128xf32> to vector<16x128xf32>
    %22 = vector.shape_cast %19 : vector<16x128xf32> to vector<1x16x128xf32>
    tpu.vector_store %arg3[%c1_8, %c0_9, %c0_10], %22 {strides = array<i32>} : memref<5x16x128xf32, #tpu.memory_space<vmem>>, vector<1x16x128xf32>,
    %c2 = arith.constant 2 : index
    %23 = memref.load %arg1[%c2] : memref<4xf32, #tpu.memory_space<smem>>
    %24 = vector.broadcast %23 : f32 to vector<16x128xf32>
    %25 = arith.mulf %1, %24 : vector<16x128xf32>
    %cst_11 = arith.constant 1.000000e+00 : f32
    %26 = vector.broadcast %cst_11 : f32 to vector<16x128xf32>
    %27 = arith.addf %26, %25 : vector<16x128xf32>
    %cst_12 = arith.constant 1.000000e+00 : f32
    %28 = vector.broadcast %cst_12 : f32 to vector<16x128xf32>
    %29 = arith.divf %28, %27 : vector<16x128xf32>
    %30 = arith.subf %29, %18 : vector<16x128xf32>
    %c2_13 = arith.constant 2 : index
    %c0_14 = arith.constant 0 : index
    %c0_15 = arith.constant 0 : index
    %31 = vector.load %arg3[%c2_13, %c0_14, %c0_15] : memref<5x16x128xf32, #tpu.memory_space<vmem>>, vector<1x16x128xf32>
    %32 = vector.shape_cast %31 : vector<1x16x128xf32> to vector<16x128xf32>
    %33 = vector.shape_cast %30 : vector<16x128xf32> to vector<1x16x128xf32>
    tpu.vector_store %arg3[%c2_13, %c0_14, %c0_15], %33 {strides = array<i32>} : memref<5x16x128xf32, #tpu.memory_space<vmem>>, vector<1x16x128xf32>,
    %c3 = arith.constant 3 : index
    %34 = memref.load %arg1[%c3] : memref<4xf32, #tpu.memory_space<smem>>
    %35 = vector.broadcast %34 : f32 to vector<16x128xf32>
    %36 = arith.mulf %1, %35 : vector<16x128xf32>
    %cst_16 = arith.constant 1.000000e+00 : f32
    %37 = vector.broadcast %cst_16 : f32 to vector<16x128xf32>
    %38 = arith.addf %37, %36 : vector<16x128xf32>
    %cst_17 = arith.constant 1.000000e+00 : f32
    %39 = vector.broadcast %cst_17 : f32 to vector<16x128xf32>
    %40 = arith.divf %39, %38 : vector<16x128xf32>
    %41 = arith.subf %40, %29 : vector<16x128xf32>
    %c3_18 = arith.constant 3 : index
    %c0_19 = arith.constant 0 : index
    %c0_20 = arith.constant 0 : index
    %42 = vector.load %arg3[%c3_18, %c0_19, %c0_20] : memref<5x16x128xf32, #tpu.memory_space<vmem>>, vector<1x16x128xf32>
    %43 = vector.shape_cast %42 : vector<1x16x128xf32> to vector<16x128xf32>
    %44 = vector.shape_cast %41 : vector<16x128xf32> to vector<1x16x128xf32>
    tpu.vector_store %arg3[%c3_18, %c0_19, %c0_20], %44 {strides = array<i32>} : memref<5x16x128xf32, #tpu.memory_space<vmem>>, vector<1x16x128xf32>,
    %cst_21 = arith.constant 1.000000e+00 : f32
    %45 = vector.broadcast %cst_21 : f32 to vector<16x128xf32>
    %46 = arith.subf %45, %40 : vector<16x128xf32>
    %c4 = arith.constant 4 : index
    %c0_22 = arith.constant 0 : index
    %c0_23 = arith.constant 0 : index
    %47 = vector.load %arg3[%c4, %c0_22, %c0_23] : memref<5x16x128xf32, #tpu.memory_space<vmem>>, vector<1x16x128xf32>
    %48 = vector.shape_cast %47 : vector<1x16x128xf32> to vector<16x128xf32>
    %49 = vector.shape_cast %46 : vector<16x128xf32> to vector<1x16x128xf32>
    tpu.vector_store %arg3[%c4, %c0_22, %c0_23], %49 {strides = array<i32>} : memref<5x16x128xf32, #tpu.memory_space<vmem>>, vector<1x16x128xf32>,
    return
  }
  func.func @transform_0(%arg0: i32) -> i32 {
    %c0_i32 = arith.constant 0 : i32
    %c0_i32_0 = arith.constant 0 : i32
    return %c0_i32 : i32
  }
  func.func @transform_1(%arg0: i32) -> (i32, i32) {
    %c0_i32 = arith.constant 0 : i32
    %c0_i32_0 = arith.constant 0 : i32
    return %arg0, %c0_i32 : i32, i32
  }
  func.func @transform_2(%arg0: i32) -> (i32, i32, i32) {
    %c0_i32 = arith.constant 0 : i32
    %c0_i32_0 = arith.constant 0 : i32
    %c0_i32_1 = arith.constant 0 : i32
    return %c0_i32, %arg0, %c0_i32_0 : i32, i32, i32
  }
}

</mosaic_0001>

<bundles_post_ra>
// kernel: tpu_custom_call.1
= control target key start
LH: loop header
LB: loop body
LE: loop exit
PB: predicated region body
PF: predicated region fallthrough
CT: control target
= control target key end

     0   :  { %7 = vsyncpa [#allocation5], 0  ;;  %s240_s0 = inlined_call_operand.hbm [shape: f32[4], index: 0, kind: input, shape index: {}]   ;;  %s241_s1 = inlined_call_operand.hbm [shape: f32[16,128], index: 1, kind: input, shape index: {}]   ;;  %s242_s2 = inlined_call_operand.hbm [shape: f32[5,16,128], index: 2, kind: output, shape index: {}]  }
   0x1   :  { %8 = vsyncpa [#allocation3], 0 }
   0x2   :  { %9 = vsyncpa [#allocation4], 0  ;;  %s205_s9 = smov [#allocation2]   ;;  %s206_s12 = smov [#allocation6]  }
   0x3   :  { %17 = dma.hbm_to_smem %s240_s0, 16, %s205_s9, [#allocation5]  }
   0x4   :  { %s23_s13 = sshll.u32 %s206_s12, 4  ;;  %s24_s13 = int_to_ptr.vmem [resolvable:$true] %s23_s13 }
   0x5   :  { %s167_s14 = scalar_lea.vmem %s24_s13, 256  ;;  %p172_p1 = scmp.lt.s32.totalorder %s24_s13, %s24_s13 }
   0x6   :  { %p168_p0 = scmp.ne.s32.totalorder %s24_s13, %s167_s14  ;;  %p173_p2 = scmp.lt.s32.totalorder %s167_s14, %s167_s14 }
   0x8   :  { %p174_p3 = por %p173_p2, %p172_p1 }
   0xa   :  { %p175_p4 = pnand %p174_p3, %p168_p0 }
   0xc   :  { %178 = shalt.err (!%p175_p4)
}
   0xd   :  { %s207_s15 = smov 128   ;;  %s208_s16 = smov 8  }
   0xe   :  { %29 = dma.hbm_to_vmem [thread:$0]  %s241_s1, 256, %s24_s13, [#allocation3], %s207_s15, %s207_s15, %s208_s16  }
   0xf   :  { %199 = dma.done.wait [#allocation5], 16  }
  0x10   :  { %200 = vsyncadd [#allocation5], 4294967280 }
  0x11   :  { %201 = dma.done.wait [#allocation3], 256  }
  0x12   :  { %202 = vsyncadd [#allocation3], 4294967040 }
  0x13   :  { %36 = sfence }
  0x14   :  { %v37_v0 = vld [vmem:[#allocation6] sm:$0xff]  ;;  %v38_v1 = vld [vmem:[#allocation6 + $0x8] sm:$0xff]  ;;  %s43_s0 = sld [smem:[#allocation2]]  ;;  %s209_s1 = smov [#allocation7]  }
  0x15   :  { %v39_v2 = vmul.f32 1.442695, %v37_v0  ;;  %v41_v3 = vmul.f32 1.442695, %v38_v1  ;;  %s123_s19 = sld [smem:[#allocation2 + $0x1]]  ;;  %s110_s22 = sshll.u32 %s209_s1, 4  ;;  %s111_s22 = int_to_ptr.vmem [resolvable:$true] %s110_s22 }
  0x16   :  { %s124_s20 = sld [smem:[#allocation2 + $0x2]]  ;;  %s179_s23 = scalar_lea.vmem %s111_s22, 1280 }
  0x17   :  { %131 = vpow2.f32 %v39_v2  ;;  %s125_s21 = sld [smem:[#allocation2 + $0x3]]  ;;  %p180_p5 = scmp.ne.s32.totalorder %s111_s22, %s179_s23 }
  0x18   :  { %133 = vpow2.f32 %v41_v3  ;;  %p184_p6 = scmp.lt.s32.totalorder %s111_s22, %s111_s22  ;;  %p185_p7 = scmp.lt.s32.totalorder %s179_s23, %s179_s23 }
  0x1a   :  { %v44_v4 = vstv %s43_s0  ;;  %p186_p8 = por %p185_p7, %p184_p6 }
  0x1b   :  { %v56_v5 = vstv %s123_s19 }
  0x1c   :  { %v71_v6 = vstv %s124_s20  ;;  %p187_p9 = pnand %p186_p8, %p180_p5 }
  0x1d   :  { %v86_v8 = vstv %s125_s21 }
  0x24   :  { %v132_v7 = vpop.eup %131 }
  0x25   :  { %v134_v9 = vpop.eup %133  ;;  %v45_v10 = vmul.f32 %v132_v7, %v44_v4  ;;  %v57_v11 = vmul.f32 %v132_v7, %v56_v5  ;;  %v72_v12 = vmul.f32 %v132_v7, %v71_v6  ;;  %v87_v18 = vmul.f32 %v132_v7, %v86_v8 }
  0x26   :  { %v46_v13 = vmul.f32 %v134_v9, %v44_v4  ;;  %v58_v14 = vmul.f32 %v134_v9, %v56_v5  ;;  %v73_v15 = vmul.f32 %v134_v9, %v71_v6  ;;  %v88_v21 = vmul.f32 %v134_v9, %v86_v8 }
  0x27   :  { %v47_v16 = vadd.f32 1.0, %v45_v10  ;;  %v59_v17 = vadd.f32 1.0, %v57_v11  ;;  %v74_v22 = vadd.f32 1.0, %v72_v12  ;;  %v89_v24 = vadd.f32 1.0, %v87_v18 }
  0x28   :  { %v48_v19 = vadd.f32 1.0, %v46_v13  ;;  %v60_v20 = vadd.f32 1.0, %v58_v14  ;;  %v75_v23 = vadd.f32 1.0, %v73_v15  ;;  %v90_v25 = vadd.f32 1.0, %v88_v21 }
  0x29   :  { %135 = vrcp.f32 %v47_v16 }
  0x2a   :  { %137 = vrcp.f32 %v48_v19 }
  0x2b   :  { %139 = vrcp.f32 %v59_v17 }
  0x2c   :  { %141 = vrcp.f32 %v60_v20 }
  0x2d   :  { %143 = vrcp.f32 %v74_v22 }
  0x2e   :  { %145 = vrcp.f32 %v75_v23 }
  0x2f   :  { %147 = vrcp.f32 %v89_v24 }
  0x30   :  { %149 = vrcp.f32 %v90_v25 }
  0x36   :  { %v136_v26 = vpop.eup %135 }
  0x37   :  { %v138_v27 = vpop.eup %137  ;;  %53 = vst [vmem:[#allocation7] sm:$0xff] %v136_v26 }
  0x38   :  { %v140_v28 = vpop.eup %139  ;;  %54 = vst [vmem:[#allocation7 + $0x8] sm:$0xff] %v138_v27 }
  0x39   :  { %v142_v29 = vpop.eup %141  ;;  %v65_v30 = vsub.f32 %v140_v28, %v136_v26 }
  0x3a   :  { %v144_v31 = vpop.eup %143  ;;  %v66_v32 = vsub.f32 %v142_v29, %v138_v27 }
  0x3b   :  { %v146_v33 = vpop.eup %145  ;;  %68 = vst [vmem:[#allocation7 + $0x10] sm:$0xff] %v65_v30  ;;  %v80_v34 = vsub.f32 %v144_v31, %v140_v28 }
  0x3c   :  { %v148_v35 = vpop.eup %147  ;;  %69 = vst [vmem:[#allocation7 + $0x18] sm:$0xff] %v66_v32  ;;  %v81_v36 = vsub.f32 %v146_v33, %v142_v29 }
  0x3d   :  { %v150_v37 = vpop.eup %149  ;;  %83 = vst [vmem:[#allocation7 + $0x20] sm:$0xff] %v80_v34  ;;  %v95_v38 = vsub.f32 %v148_v35, %v144_v31  ;;  %v100_v39 = vsub.f32 1.0, %v148_v35 }
  0x3e   :  { %84 = vst [vmem:[#allocation7 + $0x28] sm:$0xff] %v81_v36  ;;  %v96_v40 = vsub.f32 %v150_v37, %v146_v33  ;;  %v101_v41 = vsub.f32 1.0, %v150_v37 }
  0x3f   :  { %98 = vst [vmem:[#allocation7 + $0x30] sm:$0xff] %v95_v38  ;;  %103 = vst [vmem:[#allocation7 + $0x40] sm:$0xff] %v100_v39 }
  0x40   :  { %99 = vst [vmem:[#allocation7 + $0x38] sm:$0xff] %v96_v40  ;;  %104 = vst [vmem:[#allocation7 + $0x48] sm:$0xff] %v101_v41 }
  0x41   :  { %190 = shalt.err (!%p187_p9)
}
  0x42   :  { %116 = dma.vmem_to_hbm [thread:$0]  %s111_s22, 1280, %s242_s2, [#allocation4], %s207_s15, %s207_s15, %s208_s16  }
  0x43   :  { %203 = dma.done.wait [#allocation4], 1280  }
  0x44   :  { %204 = vsyncadd [#allocation4], 4294966016 }
  0x45   :  { %120 = vsyncpa [#allocation3], 1 }
  0x46   :  { %121 = vsyncpa [#allocation4], 1 }
  0x47   :  { %122 = vsyncpa [#allocation5], 1 }

</bundles_post_ra>
